<compile_context>
chip_gen: v7x
topology: tpu7x:2x2x1
jax: 0.10.0
libtpu: 0.0.40
codegen_flags: <defaults>
</compile_context>

<pallas_src>
import math

import jax
import jax.numpy as jnp
from jax.experimental import pallas as pl
from jax.experimental.pallas import tpu as pltpu


# ---------------------------------------------------------------------------
# Pass 1: d = rsqrt(rowsum(A) + 1)   (the "+1" is the identity term of A + I)
# A arrives as bf16 tiles; row-sum is accumulated in f32 directly in the
# resident output block (output index is constant along k -> stays in VMEM).
# ---------------------------------------------------------------------------
def degree_kernel(a_ref, d_ref):
    k = pl.program_id(1)

    @pl.when(k == 0)
    def _():
        d_ref[...] = jnp.ones_like(d_ref)          # +I contribution

    d_ref[...] += jnp.sum(a_ref[...].astype(jnp.float32), axis=1, keepdims=True)

    @pl.when(k == pl.num_programs(1) - 1)
    def _():
        d_ref[...] = jax.lax.rsqrt(d_ref[...])


# ---------------------------------------------------------------------------
# Pass 2: S' = d * (X @ W_pad)   -- computed once, never inside the k loop
# ---------------------------------------------------------------------------
def support_kernel(d_ref, x_ref, w_ref, sp_ref):
    s = jnp.dot(x_ref[...], w_ref[...], preferred_element_type=jnp.float32)
    sp_ref[...] = d_ref[...] * s


# ---------------------------------------------------------------------------
# Pass 3 (resident S'): out = d * (A @ S' + S') + b
# S' is a full-array VMEM-resident block; both the k-slice (A columns) and the
# i-slice (self/identity term) are sliced from it in-kernel.  Accumulation is
# done directly in the resident output block (no scratch).
# A is bf16 in HBM/VMEM; upcast to f32 before the MXU dot to preserve accuracy.
# NOTE: on v7x the f32 MXU path (~250 TF/s) may cap below the 3.2 TB/s HBM
# roofline; casting S' to bf16 would fix that but breaks the 1e-4 tolerance,
# so it is intentionally not done here.
# ---------------------------------------------------------------------------
def aggregate_resident_kernel(a_ref, sp_ref, d_ref, b_ref, out_ref):
    i = pl.program_id(0)
    k = pl.program_id(1)
    tm = out_ref.shape[0]
    tk = a_ref.shape[1]

    @pl.when(k == 0)
    def _():
        # self (identity) term of (A + I): S' rows of this output row-block
        out_ref[...] = sp_ref[pl.ds(pl.multiple_of(i * tm, tm), tm), :]

    sp_k = sp_ref[pl.ds(pl.multiple_of(k * tk, tk), tk), :]
    out_ref[...] += jnp.dot(a_ref[...].astype(jnp.float32), sp_k,
                            preferred_element_type=jnp.float32)

    @pl.when(k == pl.num_programs(1) - 1)
    def _():
        out_ref[...] = d_ref[...] * out_ref[...] + b_ref[...]


# ---------------------------------------------------------------------------
# Pass 3 (streaming fallback for very large graphs): S' k/i slices are
# streamed via BlockSpec instead of being fully resident.
# ---------------------------------------------------------------------------
def aggregate_stream_kernel(a_ref, spk_ref, spi_ref, d_ref, b_ref, out_ref):
    k = pl.program_id(1)

    @pl.when(k == 0)
    def _():
        out_ref[...] = spi_ref[...]                # self term

    out_ref[...] += jnp.dot(a_ref[...].astype(jnp.float32), spk_ref[...],
                            preferred_element_type=jnp.float32)

    @pl.when(k == pl.num_programs(1) - 1)
    def _():
        out_ref[...] = d_ref[...] * out_ref[...] + b_ref[...]


# ---------------------------------------------------------------------------
# Wrapper
# ---------------------------------------------------------------------------
def _round_up(x: int, m: int) -> int:
    return (x + m - 1) // m * m


def graph_convolution(adjacency, x, weight, bias):
    """adjacency: (N, N) dense float, x: (N, Din), weight: (Din, Dout), bias: (Dout,)."""
    n, din = x.shape
    dout = weight.shape[1]

    # Lane-dense output: pad Dout up to a multiple of 128 (unmasked vst, full MXU width).
    dout_p = _round_up(max(dout, 128), 128)
    w_pad = jnp.zeros((din, dout_p), jnp.float32).at[:, :dout].set(weight.astype(jnp.float32))
    b_pad = jnp.zeros((1, dout_p), jnp.float32).at[0, :dout].set(bias.astype(jnp.float32))

    # Node-dimension tiling: large tiles to amortize per-step overhead, grid_i kept >= 2
    # so the "parallel" row axis shards across both v7x TensorCores.  tm | tk | n_p.
    if n <= 1024:
        n_p = _round_up(max(n, 256), 256)
        tm = n_p // 2
        tk = n_p
    else:
        tm = 512
        n_p = _round_up(n, 512)
        if n_p % 2048 == 0:
            tk = 2048
        elif n_p % 1024 == 0:
            tk = 1024
        else:
            tk = 512

    # A streamed as bf16 (exact for binary adjacency) -> halves the dominant HBM stream.
    a_pad = jnp.zeros((n_p, n_p), jnp.bfloat16).at[:n, :n].set(adjacency.astype(jnp.bfloat16))
    x_pad = jnp.zeros((n_p, din), jnp.float32).at[:n, :].set(x.astype(jnp.float32))

    grid_i = n_p // tm
    grid_k = n_p // tk

    # Above v5e's 16 MiB scoped default, comfortably below v7x's 64 MiB physical VMEM.
    vmem_limit = 48 * 1024 * 1024

    # ---- pass 1: degrees -> d = rsqrt(rowsum(A) + 1) ----
    d = pl.pallas_call(
        degree_kernel,
        out_shape=jax.ShapeDtypeStruct((n_p, 1), jnp.float32),
        grid=(grid_i, grid_k),
        in_specs=[pl.BlockSpec((tm, tk), lambda i, k: (i, k))],
        out_specs=pl.BlockSpec((tm, 1), lambda i, k: (i, 0)),
        compiler_params=pltpu.CompilerParams(
            dimension_semantics=("parallel", "arbitrary"),
            vmem_limit_bytes=vmem_limit),
    )(a_pad)

    # ---- pass 2: S' = d * (X @ W_pad) ----
    s_prime = pl.pallas_call(
        support_kernel,
        out_shape=jax.ShapeDtypeStruct((n_p, dout_p), jnp.float32),
        grid=(grid_i,),
        in_specs=[
            pl.BlockSpec((tm, 1), lambda i: (i, 0)),
            pl.BlockSpec((tm, din), lambda i: (i, 0)),
            pl.BlockSpec((din, dout_p), lambda i: (0, 0)),
        ],
        out_specs=pl.BlockSpec((tm, dout_p), lambda i: (i, 0)),
        compiler_params=pltpu.CompilerParams(
            dimension_semantics=("parallel",),
            vmem_limit_bytes=vmem_limit),
    )(d, x_pad, w_pad)

    # ---- pass 3: out = d * (A @ S' + S') + b ----
    sp_bytes = n_p * dout_p * 4
    # Budget 2x S' (possible double-buffering of the constant-index block) + A tiles.
    resident = 2 * sp_bytes <= 16 * 1024 * 1024

    cost = pl.CostEstimate(
        flops=2 * n_p * n_p * dout_p,
        transcendentals=0,
        bytes_accessed=(2 * n_p * n_p                         # A (bf16) once
                        + 4 * (2 * n_p * dout_p               # S' read + out write
                               + n_p + dout_p)),              # d, bias
    )
    common = dict(
        out_shape=jax.ShapeDtypeStruct((n_p, dout_p), jnp.float32),
        grid=(grid_i, grid_k),
        out_specs=pl.BlockSpec((tm, dout_p), lambda i, k: (i, 0)),
        compiler_params=pltpu.CompilerParams(
            dimension_semantics=("parallel", "arbitrary"),
            vmem_limit_bytes=vmem_limit),
        cost_estimate=cost,
    )

    if resident:
        out_p = pl.pallas_call(
            aggregate_resident_kernel,
            in_specs=[
                pl.BlockSpec((tm, tk), lambda i, k: (i, k)),        # A tile (bf16)
                pl.BlockSpec((n_p, dout_p), lambda i, k: (0, 0)),   # S' resident in VMEM
                pl.BlockSpec((tm, 1), lambda i, k: (i, 0)),         # d for the output rows
                pl.BlockSpec((1, dout_p), lambda i, k: (0, 0)),     # bias
            ],
            **common,
        )(a_pad, s_prime, d, b_pad)
    else:
        out_p = pl.pallas_call(
            aggregate_stream_kernel,
            in_specs=[
                pl.BlockSpec((tm, tk), lambda i, k: (i, k)),        # A tile (bf16)
                pl.BlockSpec((tk, dout_p), lambda i, k: (k, 0)),    # S' rows matching A columns
                pl.BlockSpec((tm, dout_p), lambda i, k: (i, 0)),    # S' rows matching A rows
                pl.BlockSpec((tm, 1), lambda i, k: (i, 0)),         # d for the output rows
                pl.BlockSpec((1, dout_p), lambda i, k: (0, 0)),     # bias
            ],
            **common,
        )(a_pad, s_prime, s_prime, d, b_pad)

    return out_p[:n, :dout]


# ---------------------------------------------------------------------------
# Pure-JAX reference of the PyTorch forward
# ---------------------------------------------------------------------------
def reference(adjacency, x, weight, bias):
    n = adjacency.shape[0]
    a_hat = adjacency + jnp.eye(n, dtype=jnp.float32)
    deg = a_hat.sum(axis=1)
    d_inv_sqrt = jnp.power(deg, -0.5)
    L = d_inv_sqrt[:, None] * a_hat * d_inv_sqrt[None, :]
    support = x @ weight
    return L @ support + bias[None, :]


if __name__ == "__main__":
    key = jax.random.PRNGKey(0)
    k_adj, k_x, k_w = jax.random.split(key, 3)

    N = 64          # number of graph nodes
    INPUT_DIM = 32
    OUTPUT_DIM = 16

    # Deterministic symmetric binary adjacency (no self loops; normalization adds I).
    rand = jax.random.uniform(k_adj, (N, N))
    upper = (rand > 0.85).astype(jnp.float32)
    adjacency = jnp.triu(upper, k=1)
    adjacency = adjacency + adjacency.T

    # Node features.
    x = jax.random.normal(k_x, (N, INPUT_DIM), dtype=jnp.float32)

    # Parameters: kaiming_uniform_ on (input_dim, output_dim) -> fan_in = output_dim,
    # bound = sqrt(6 / fan_in); bias zero-init.
    bound = math.sqrt(6.0 / OUTPUT_DIM)
    weight = jax.random.uniform(k_w, (INPUT_DIM, OUTPUT_DIM),
                                minval=-bound, maxval=bound, dtype=jnp.float32)
    bias = jnp.zeros((OUTPUT_DIM,), dtype=jnp.float32)

    out = graph_convolution(adjacency, x, weight, bias)
    out = jax.block_until_ready(out)

    ref = reference(adjacency, x, weight, bias)
    assert out.shape == (N, OUTPUT_DIM)
    assert jnp.allclose(out, ref, atol=1e-4, rtol=1e-4), "mismatch vs reference"

    print("KERNEL_OK")
</pallas_src>

<mosaic_0001>
module attributes {stable_mosaic.version = 11 : i64} {
  func.func @degree_kernel(%arg0: i32, %arg1: i32, %arg2: memref<128x256xbf16, #tpu.memory_space<vmem>>, %arg3: memref<128x1xf32, #tpu.memory_space<vmem>>) attributes {dimension_semantics = [#tpu.dimension_semantics<parallel>, #tpu.dimension_semantics<arbitrary>], iteration_bounds = array<i64: 2, 1>, scalar_prefetch = 0 : i64, scratch_operands = 0 : i64, tpu.core_type = #tpu.core_type<tc>, window_params = [{transform_indices = @transform_0, window_bounds = array<i64: 128, 256>}, {transform_indices = @transform_1, window_bounds = array<i64: 128, 1>}]} {
    %c0_i32 = arith.constant 0 : i32
    %0 = arith.cmpi eq, %arg1, %c0_i32 : i32
    %1 = arith.extui %0 : i1 to i32
    %c0_i32_0 = arith.constant 0 : i32
    %2 = arith.cmpi ne, %1, %c0_i32_0 : i32
    scf.if %2 {
      %cst_8 = arith.constant 1.000000e+00 : f32
      %13 = vector.broadcast %cst_8 : f32 to vector<128x1xf32>
      %c0_9 = arith.constant 0 : index
      %c0_10 = arith.constant 0 : index
      %14 = vector.load %arg3[%c0_9, %c0_10] : memref<128x1xf32, #tpu.memory_space<vmem>>, vector<128x1xf32>
      tpu.vector_store %arg3[%c0_9, %c0_10], %13 {strides = array<i32>} : memref<128x1xf32, #tpu.memory_space<vmem>>, vector<128x1xf32>,
    } else {
    }
    %c0 = arith.constant 0 : index
    %c0_1 = arith.constant 0 : index
    %3 = vector.load %arg3[%c0, %c0_1] : memref<128x1xf32, #tpu.memory_space<vmem>>, vector<128x1xf32>
    %c0_2 = arith.constant 0 : index
    %c0_3 = arith.constant 0 : index
    %4 = vector.load %arg2[%c0_2, %c0_3] : memref<128x256xbf16, #tpu.memory_space<vmem>>, vector<128x256xbf16>
    %5 = arith.extf %4 : vector<128x256xbf16> to vector<128x256xf32>
    %cst = arith.constant dense<0.000000e+00> : vector<128xf32>
    %6 = vector.multi_reduction <add>, %5, %cst [1] : vector<128x256xf32> to vector<128xf32>
    %7 = vector.shape_cast %6 : vector<128xf32> to vector<128x1xf32>
    %8 = arith.addf %3, %7 : vector<128x1xf32>
    %c0_4 = arith.constant 0 : index
    %c0_5 = arith.constant 0 : index
    %9 = vector.load %arg3[%c0_4, %c0_5] : memref<128x1xf32, #tpu.memory_space<vmem>>, vector<128x1xf32>
    tpu.vector_store %arg3[%c0_4, %c0_5], %8 {strides = array<i32>} : memref<128x1xf32, #tpu.memory_space<vmem>>, vector<128x1xf32>,
    %c0_i32_6 = arith.constant 0 : i32
    %10 = arith.cmpi eq, %arg1, %c0_i32_6 : i32
    %11 = arith.extui %10 : i1 to i32
    %c0_i32_7 = arith.constant 0 : i32
    %12 = arith.cmpi ne, %11, %c0_i32_7 : i32
    scf.if %12 {
      %c0_8 = arith.constant 0 : index
      %c0_9 = arith.constant 0 : index
      %13 = vector.load %arg3[%c0_8, %c0_9] : memref<128x1xf32, #tpu.memory_space<vmem>>, vector<128x1xf32>
      %14 = math.rsqrt %13 : vector<128x1xf32>
      %c0_10 = arith.constant 0 : index
      %c0_11 = arith.constant 0 : index
      %15 = vector.load %arg3[%c0_10, %c0_11] : memref<128x1xf32, #tpu.memory_space<vmem>>, vector<128x1xf32>
      tpu.vector_store %arg3[%c0_10, %c0_11], %14 {strides = array<i32>} : memref<128x1xf32, #tpu.memory_space<vmem>>, vector<128x1xf32>,
    } else {
    }
    return
  }
  func.func @transform_0(%arg0: i32, %arg1: i32) -> (i32, i32) {
    %c0_i32 = arith.constant 0 : i32
    return %arg0, %arg1 : i32, i32
  }
  func.func @transform_1(%arg0: i32, %arg1: i32) -> (i32, i32) {
    %c0_i32 = arith.constant 0 : i32
    %c0_i32_0 = arith.constant 0 : i32
    return %arg0, %c0_i32 : i32, i32
  }
}

</mosaic_0001>

<bundles_post_ra>
// kernel: tpu_custom_call.1
= control target key start
LH: loop header
LB: loop body
LE: loop exit
PB: predicated region body
PF: predicated region fallthrough
CT: control target
= control target key end

     0   :  { %6 = vsyncpa [#allocation3], 0  ;;  %s926_s0 = inlined_call_operand.hbm [shape: bf16[256,256], index: 0, kind: input, shape index: {}]   ;;  %s927_s1 = inlined_call_operand.vmem [shape: f32[256,1], index: 1, kind: output, shape index: {}]  }
   0x1   :  { %8 = vsyncpa [#allocation3 + $0x1], 0  ;;  %s655_s6 = smov 0   ;;  %s657_s7 = smov 0  }
   0x2   :  { %s659_s8 = smov 0   ;;  %s661_s9 = smov 0  }
   0x3   :  { %s663_s10 = smov 0   ;;  %s665_s11 = smov 0  }
   0x4 LB: > { %s453_s12 = sadd.s32 4294967295, %s639_s11   ;;  %s26_s13 = sadd.s32 1, %s635_s10  ;;  %s639_s11 = sphi %s665_s11, %s14_s11   ;;  %s635_s10 = sphi %s663_s10, %s935_s10   ;;  %s631_s9 = sphi %s661_s9, %s934_s9   ;;  %s627_s8 = sphi %s659_s8, %s933_s8   ;;  %s623_s7 = sphi %s657_s7, %s932_s7   ;;  %s619_s6 = sphi %s655_s6, %s931_s6  }
   0x5   : > { %p28_p0 = scmp.ge.s32.totalorder %s26_s13, 2  ;;  %s35_s14 = sadd.s32 1, %s627_s8 }
   0x6   : > { %p42_p1 = scmp.ne.s32.totalorder %s627_s8, %s623_s7  ;;  %p43_p2 = scmp.eq.s32.totalorder %s639_s11, 0 }
   0x7   : > { %s937_s13 = smov (%p28_p0, %s26_s13), 0  ;;  %p48_p4 = scmp.ne.s32.totalorder %s623_s7, %s619_s6 }
   0x8   : > { %p691_p3 = por %p43_p2, %p42_p1  ;;  %s30_s16 = ssub.s32 %s635_s10, %s937_s13 }
   0x9   : > { %p49_p5 = scmp.eq.s32.totalorder %s453_s12, 0  ;;  %p33_p6 = scmp.eq.s32.totalorder %s30_s16, 0 }
   0xa   : > { %p475_p8 = scmp.lt.s32.totalorder %s639_s11, 2  ;;  %s98_s19 = sand.u32 1, %s627_s8  }
   0xb   : > { %p698_p7 = por %p49_p5, %p48_p4  ;;  %s468_s20 = sshll.u32 %s635_s10, 11 }
   0xc   : > { %s704_s18 = scalar_select %p33_p6, %s627_s8, %s35_s14  }
   0xd   : > { %s457_s21 = sshll.u32 %s98_s19, 7  ;;  %s711_s24 = scalar_lea.hbm %s926_s0, %s468_s20 }
   0xe   : > { %s102_s25 = scalar_lea.vmem [#allocation2], %s457_s21  ;;  %p715_p9 = pnand %p475_p8, %p691_p3 }
   0xf   : > { %s112_s26 = sshll.u32 %s102_s25, 4  ;;  %s721_s28 = scalar_lea.sflag [#allocation3], %s98_s19  ;;  %s719_s26 = int_to_ptr.vmem [resolvable:$true] %s112_s26 }
  0x10   : > { %s559_s29 = scalar_lea.hbm %s711_s24, 2048  ;;  %p561_p11 = pneg %p715_p9 }
  0x11   : > { %p560_p10 = scmp.ne.s32.totalorder %s711_s24, %s559_s29  ;;  %s564_s3 = scalar_lea.hbm %s926_s0, 4096 }
  0x12   : > { %p565_p0 = scmp.lt.u32.totalorder %s711_s24, %s926_s0  ;;  %p566_p1 = scmp.lt.u32.totalorder %s564_s3, %s559_s29 }
  0x13   : > { %p562_p12 = pnand %p561_p11, %p560_p10  ;;  %p568_p3 = scmp.lt.u32.totalorder %s559_s29, %s711_s24 }
  0x14   : > { %p567_p2 = por %p566_p1, %p565_p0 }
  0x15   : > { %p563_p13 = pneg %p562_p12 }
  0x16   : > { %p569_p4 = por %p568_p3, %p567_p2 }
  0x18   : > { %p570_p5 = pnand %p569_p4, %p563_p13 }
  0x1a   : > { %573 = shalt.err (!%p570_p5)
}
  0x1b   : > { %s574_s6 = scalar_lea.vmem %s719_s26, 2048  ;;  %s641_s12 = smov [#allocation2]  }
  0x1c   : > { %p575_p6 = scmp.ne.s32.totalorder %s719_s26, %s574_s6  ;;  %s579_s14 = sshll.u32 %s641_s12, 4  ;;  %s580_s14 = int_to_ptr.vmem [resolvable:$false] %s579_s14 }
  0x1d   : > { %s581_s15 = scalar_lea.vmem %s580_s14, 4096  ;;  %p582_p12 = scmp.lt.s32.totalorder %s719_s26, %s580_s14 }
  0x1e   : > { %p577_p8 = pnand %p575_p6, %p561_p11  ;;  %p583_p0 = scmp.lt.s32.totalorder %s581_s15, %s574_s6 }
  0x20   : > { %p578_p10 = pneg %p577_p8  ;;  %p584_p1 = por %p583_p0, %p582_p12 }
  0x22   : > { %p585_p2 = pnand %p584_p1, %p578_p10 }
  0x24   : > { %588 = shalt.err (!%p585_p2)
}
  0x25   : > { %s642_s16 = smov 128   ;;  %s643_s19 = smov 8  }
  0x26   : > { %474 = dma.hbm_to_vmem [thread:$0]  (!%p715_p9), %s711_s24, 2048, %s719_s26, %s721_s28, %s642_s16, %s642_s16, %s643_s19  }
  0x27   : > { %p461_p11 = scmp.ge.s32.totalorder %s639_s11, 1  ;;  %p120_p13 = scmp.lt.s32.totalorder %s639_s11, 3 }
  0x29   : > { %p121_p3 = pnand %p461_p11, %p120_p13 }
  0x2a   : > { %s126_s20 = sand.u32 (!%p121_p3), 1, %s623_s7  }
  0x2b   : > { %124 = sbr.rel (%p121_p3) target bundleno = 249 (0xf9), region = 24  ;;  %s462_s21 = sshll.u32 (!%p121_p3), %s126_s20, 7 }
  0x2c   : > { %s127_s22 = scalar_lea.sflag (!%p121_p3), [#allocation3], %s126_s20  ;;  %s752_s23 = scalar_lea.vmem (!%p121_p3), [#allocation2], %s462_s21 }
  0x32   : > { %614 = dma.done.wait (%p698_p7), %s127_s22, 2048  }
  0x33   : > { %616 = vsyncadd (%p698_p7), %s127_s22, 4294965248  ;;  %s463_s24 = sshll.u32 %s631_s9, 4  ;;  %vm161_vm0 = vcmask 7168   ;;  %v196_v0 = vld [vmem:[%s752_s23 + $0x10] sm:$0xff]  ;;  %v194_v1 = vld [vmem:[%s752_s23] sm:$0xff]  ;;  %v644_v3 = vmov 1.0  }
  0x34   : > { %p152_p9 = scmp.lt.s32.totalorder %s463_s24, 31  ;;  %v197_v2 = vld [vmem:[%s752_s23 + $0x18] sm:$0xff]  ;;  %v214_v4 = vunpack.c.l.bf16 %v196_v0  ;;  %v215_v5 = vunpack.c.h.bf16 %v196_v0  ;;  %v210_v6 = vunpack.c.l.bf16 %v194_v1  ;;  %v211_v7 = vunpack.c.h.bf16 %v194_v1  ;;  %v195_v8 = vld [vmem:[%s752_s23 + $0x8] sm:$0xff]  ;;  %v198_v14 = vld [vmem:[%s752_s23 + $0x20] sm:$0xff] }
  0x35   : > { %v199_v9 = vld [vmem:[%s752_s23 + $0x28] sm:$0xff]  ;;  %v216_v10 = vunpack.c.l.bf16 %v197_v2  ;;  %v217_v11 = vunpack.c.h.bf16 %v197_v2  ;;  %v212_v12 = vunpack.c.l.bf16 %v195_v8  ;;  %v213_v13 = vunpack.c.h.bf16 %v195_v8  ;;  %v201_v23 = vld [vmem:[%s752_s23 + $0x38] sm:$0xff]  ;;  %v200_v24 = vld [vmem:[%s752_s23 + $0x30] sm:$0xff] }
  0x36   : > { %s939_s24 = smov (!%p152_p9, %s463_s24), 31  ;;  %v248_v15 = vadd.f32 %v215_v5, %v214_v4  ;;  %v242_v16 = vadd.f32 %v211_v7, %v210_v6  ;;  %v220_v17 = vunpack.c.l.bf16 %v199_v9  ;;  %v221_v18 = vunpack.c.h.bf16 %v199_v9  ;;  %v203_v31 = vld [vmem:[%s752_s23 + $0x48] sm:$0xff]  ;;  %v202_v32 = vld [vmem:[%s752_s23 + $0x40] sm:$0xff]  ;;  %v205_v39 = vld [vmem:[%s752_s23 + $0x58] sm:$0xff] }
  0x37   : > { %s464_s25 = sshll.u32 %s939_s24, 3  ;;  %v251_v19 = vadd.f32 %v217_v11, %v216_v10  ;;  %v245_v20 = vadd.f32 %v213_v13, %v212_v12  ;;  %v218_v21 = vunpack.c.l.bf16 %v198_v14  ;;  %v219_v22 = vunpack.c.h.bf16 %v198_v14  ;;  %v204_v40 = vld [vmem:[%s752_s23 + $0x50] sm:$0xff]  ;;  %v207_v47 = vld [vmem:[%s752_s23 + $0x68] sm:$0xff]  ;;  %v206_v48 = vld [vmem:[%s752_s23 + $0x60] sm:$0xff] }
  0x38   : > { %s762_s28 = scalar_lea.vmem %s927_s1, %s464_s25  ;;  %249 = vadd.xlane.f32.xlu1 %v248_v15  ;;  %243 = vadd.xlane.f32.xlu0 %v242_v16  ;;  %v257_v25 = vadd.f32 %v221_v18, %v220_v17  ;;  %v224_v26 = vunpack.c.l.bf16 %v201_v23  ;;  %v225_v28 = vunpack.c.h.bf16 %v201_v23  ;;  %v222_v29 = vunpack.c.l.bf16 %v200_v24  ;;  %v209_v55 = vld [vmem:[%s752_s23 + $0x78] sm:$0xff]  ;;  %v208_v56 = vld [vmem:[%s752_s23 + $0x70] sm:$0xff] }
  0x39   : > { %164 = vst.msk [vmem:[%s762_s28 + $0x10] sm:$0xff] %vm161_vm0, %v644_v3  ;;  %162 = vst.msk [vmem:[%s762_s28] sm:$0xff] %vm161_vm0, %v644_v3  ;;  %v254_v27 = vadd.f32 %v219_v22, %v218_v21  ;;  %v223_v30 = vunpack.c.h.bf16 %v200_v24  ;;  %v228_v33 = vunpack.c.l.bf16 %v203_v31  ;;  %v229_v34 = vunpack.c.h.bf16 %v203_v31 }
  0x3a   : > { %163 = vst.msk [vmem:[%s762_s28 + $0x8] sm:$0xff] %vm161_vm0, %v644_v3  ;;  %165 = vst.msk [vmem:[%s762_s28 + $0x18] sm:$0xff] %vm161_vm0, %v644_v3  ;;  %v263_v35 = vadd.f32 %v225_v28, %v224_v26  ;;  %v226_v37 = vunpack.c.l.bf16 %v202_v32  ;;  %v227_v38 = vunpack.c.h.bf16 %v202_v32  ;;  %v232_v42 = vunpack.c.l.bf16 %v205_v39 }
  0x3b   : > { %166 = vst.msk [vmem:[%s762_s28 + $0x20] sm:$0xff] %vm161_vm0, %v644_v3  ;;  %167 = vst.msk [vmem:[%s762_s28 + $0x28] sm:$0xff] %vm161_vm0, %v644_v3  ;;  %v260_v36 = vadd.f32 %v223_v30, %v222_v29  ;;  %v269_v41 = vadd.f32 %v229_v34, %v228_v33  ;;  %v233_v44 = vunpack.c.h.bf16 %v205_v39  ;;  %v230_v45 = vunpack.c.l.bf16 %v204_v40 }
  0x3c   : > { %168 = vst.msk [vmem:[%s762_s28 + $0x30] sm:$0xff] %vm161_vm0, %v644_v3  ;;  %169 = vst.msk [vmem:[%s762_s28 + $0x38] sm:$0xff] %vm161_vm0, %v644_v3  ;;  %252 = vadd.xlane.f32.xlu1 %v251_v19  ;;  %246 = vadd.xlane.f32.xlu0 %v245_v20  ;;  %v266_v43 = vadd.f32 %v227_v38, %v226_v37  ;;  %v231_v46 = vunpack.c.h.bf16 %v204_v40  ;;  %v236_v49 = vunpack.c.l.bf16 %v207_v47  ;;  %v237_v50 = vunpack.c.h.bf16 %v207_v47 }
  0x3d   : > { %170 = vst.msk [vmem:[%s762_s28 + $0x40] sm:$0xff] %vm161_vm0, %v644_v3  ;;  %171 = vst.msk [vmem:[%s762_s28 + $0x48] sm:$0xff] %vm161_vm0, %v644_v3  ;;  %v275_v51 = vadd.f32 %v233_v44, %v232_v42  ;;  %v234_v53 = vunpack.c.l.bf16 %v206_v48  ;;  %v235_v54 = vunpack.c.h.bf16 %v206_v48  ;;  %v240_v58 = vunpack.c.l.bf16 %v209_v55 }
  0x3e   : > { %172 = vst.msk [vmem:[%s762_s28 + $0x50] sm:$0xff] %vm161_vm0, %v644_v3  ;;  %173 = vst.msk [vmem:[%s762_s28 + $0x58] sm:$0xff] %vm161_vm0, %v644_v3  ;;  %v272_v52 = vadd.f32 %v231_v46, %v230_v45  ;;  %v281_v57 = vadd.f32 %v237_v50, %v236_v49  ;;  %v241_v60 = vunpack.c.h.bf16 %v209_v55  ;;  %v238_v61 = vunpack.c.l.bf16 %v208_v56 }
  0x3f   : > { %174 = vst.msk [vmem:[%s762_s28 + $0x60] sm:$0xff] %vm161_vm0, %v644_v3  ;;  %175 = vst.msk [vmem:[%s762_s28 + $0x68] sm:$0xff] %vm161_vm0, %v644_v3  ;;  %v278_v59 = vadd.f32 %v235_v54, %v234_v53  ;;  %v239_v62 = vunpack.c.h.bf16 %v208_v56 }
  0x40   : > { %176 = vst.msk [vmem:[%s762_s28 + $0x70] sm:$0xff] %vm161_vm0, %v644_v3  ;;  %177 = vst.msk [vmem:[%s762_s28 + $0x78] sm:$0xff] %vm161_vm0, %v644_v3  ;;  %258 = vadd.xlane.f32.xlu1 %v257_v25  ;;  %255 = vadd.xlane.f32.xlu0 %v254_v27  ;;  %v287_v63 = vadd.f32 %v241_v60, %v240_v58  ;;  %v180_v1 = vld [vmem:[%s762_s28 + $0x10] sm:$0xff]  ;;  %v178_v2 = vld [vmem:[%s762_s28] sm:$0xff] }
  0x41   : > { %v284_v0 = vadd.f32 %v239_v62, %v238_v61  ;;  %v181_v7 = vld [vmem:[%s762_s28 + $0x18] sm:$0xff]  ;;  %v179_v8 = vld [vmem:[%s762_s28 + $0x8] sm:$0xff] }
  0x42   : > { %v183_v13 = vld [vmem:[%s762_s28 + $0x28] sm:$0xff]  ;;  %v182_v14 = vld [vmem:[%s762_s28 + $0x20] sm:$0xff] }
  0x43   : > { %v185_v19 = vld [vmem:[%s762_s28 + $0x38] sm:$0xff]  ;;  %v184_v22 = vld [vmem:[%s762_s28 + $0x30] sm:$0xff] }
  0x44   : > { %264 = vadd.xlane.f32.xlu1 %v263_v35  ;;  %261 = vadd.xlane.f32.xlu0 %v260_v36  ;;  %v187_v27 = vld [vmem:[%s762_s28 + $0x48] sm:$0xff]  ;;  %v186_v30 = vld [vmem:[%s762_s28 + $0x40] sm:$0xff] }
  0x45   : > { %v189_v35 = vld [vmem:[%s762_s28 + $0x58] sm:$0xff]  ;;  %v188_v38 = vld [vmem:[%s762_s28 + $0x50] sm:$0xff] }
  0x46   : > { %v191_v44 = vld [vmem:[%s762_s28 + $0x68] sm:$0xff]  ;;  %v190_v48 = vld [vmem:[%s762_s28 + $0x60] sm:$0xff] }
  0x47   : > { %v193_v54 = vld [vmem:[%s762_s28 + $0x78] sm:$0xff]  ;;  %v192_v58 = vld [vmem:[%s762_s28 + $0x70] sm:$0xff] }
  0x48   : > { %270 = vadd.xlane.f32.xlu1 %v269_v41  ;;  %267 = vadd.xlane.f32.xlu0 %v266_v43 }
  0x4c   : > { %276 = vadd.xlane.f32.xlu1 %v275_v51  ;;  %273 = vadd.xlane.f32.xlu0 %v272_v52 }
  0x50   : > { %282 = vadd.xlane.f32.xlu1 %v281_v57  ;;  %279 = vadd.xlane.f32.xlu0 %v278_v59 }
  0x54   : > { %288 = vadd.xlane.f32.xlu1 %v287_v63  ;;  %285 = vadd.xlane.f32.xlu0 %v284_v0 }
  0xc5   : > { %v250_v3 = vpop.xlane.xlu1 %249  ;;  %v244_v4 = vpop.xlane.xlu0 %243 }
  0xc6   : > { %v292_v5 = vadd.f32 %v250_v3, %v180_v1  ;;  %v290_v6 = vadd.f32 %v244_v4, %v178_v2 }
  0xc8   : > { %309 = vst.msk [vmem:[%s762_s28 + $0x10] sm:$0xff] %vm161_vm0, %v292_v5  ;;  %307 = vst.msk [vmem:[%s762_s28] sm:$0xff] %vm161_vm0, %v290_v6 }
  0xc9   : > { %v253_v9 = vpop.xlane.xlu1 %252  ;;  %v247_v10 = vpop.xlane.xlu0 %246 }
  0xca   : > { %v293_v11 = vadd.f32 %v253_v9, %v181_v7  ;;  %v291_v12 = vadd.f32 %v247_v10, %v179_v8 }
  0xcc   : > { %310 = vst.msk [vmem:[%s762_s28 + $0x18] sm:$0xff] %vm161_vm0, %v293_v11  ;;  %308 = vst.msk [vmem:[%s762_s28 + $0x8] sm:$0xff] %vm161_vm0, %v291_v12 }
  0xcd   : > { %v259_v15 = vpop.xlane.xlu1 %258  ;;  %v256_v16 = vpop.xlane.xlu0 %255 }
  0xce   : > { %v295_v17 = vadd.f32 %v259_v15, %v183_v13  ;;  %v294_v18 = vadd.f32 %v256_v16, %v182_v14 }
  0xcf   : > { %v328_v20 = vld [vmem:[%s762_s28 + $0x10] sm:$0xff]  ;;  %v326_v21 = vld [vmem:[%s762_s28] sm:$0xff] }
  0xd0   : > { %527 = vrsqrt.f32 %v328_v20  ;;  %312 = vst.msk [vmem:[%s762_s28 + $0x28] sm:$0xff] %vm161_vm0, %v295_v17  ;;  %311 = vst.msk [vmem:[%s762_s28 + $0x20] sm:$0xff] %vm161_vm0, %v294_v18 }
  0xd1   : > { %529 = vrsqrt.f32 %v326_v21  ;;  %v265_v23 = vpop.xlane.xlu1 %264  ;;  %v262_v24 = vpop.xlane.xlu0 %261 }
  0xd2   : > { %v297_v25 = vadd.f32 %v265_v23, %v185_v19  ;;  %v296_v26 = vadd.f32 %v262_v24, %v184_v22 }
  0xd3   : > { %v329_v28 = vld [vmem:[%s762_s28 + $0x18] sm:$0xff]  ;;  %v327_v29 = vld [vmem:[%s762_s28 + $0x8] sm:$0xff] }
  0xd4   : > { %531 = vrsqrt.f32 %v329_v28  ;;  %314 = vst.msk [vmem:[%s762_s28 + $0x38] sm:$0xff] %vm161_vm0, %v297_v25  ;;  %313 = vst.msk [vmem:[%s762_s28 + $0x30] sm:$0xff] %vm161_vm0, %v296_v26 }
  0xd5   : > { %533 = vrsqrt.f32 %v327_v29  ;;  %v271_v31 = vpop.xlane.xlu1 %270  ;;  %v268_v32 = vpop.xlane.xlu0 %267 }
  0xd6   : > { %v299_v33 = vadd.f32 %v271_v31, %v187_v27  ;;  %v298_v34 = vadd.f32 %v268_v32, %v186_v30 }
  0xd7   : > { %v331_v36 = vld [vmem:[%s762_s28 + $0x28] sm:$0xff]  ;;  %v330_v37 = vld [vmem:[%s762_s28 + $0x20] sm:$0xff] }
  0xd8   : > { %535 = vrsqrt.f32 %v331_v36  ;;  %316 = vst.msk [vmem:[%s762_s28 + $0x48] sm:$0xff] %vm161_vm0, %v299_v33  ;;  %315 = vst.msk [vmem:[%s762_s28 + $0x40] sm:$0xff] %vm161_vm0, %v298_v34 }
  0xd9   : > { %537 = vrsqrt.f32 %v330_v37  ;;  %v277_v39 = vpop.xlane.xlu1 %276  ;;  %v274_v40 = vpop.xlane.xlu0 %273 }
  0xda   : > { %v528_v41 = vpop.eup %527  ;;  %v301_v42 = vadd.f32 %v277_v39, %v189_v35  ;;  %v300_v43 = vadd.f32 %v274_v40, %v188_v38 }
  0xdb   : > { %v530_v45 = vpop.eup %529  ;;  %360 = vst.msk [vmem:[%s762_s28 + $0x10] sm:$0xff] %vm161_vm0, %v528_v41  ;;  %v333_v46 = vld [vmem:[%s762_s28 + $0x38] sm:$0xff]  ;;  %v332_v47 = vld [vmem:[%s762_s28 + $0x30] sm:$0xff] }
  0xdc   : > { %358 = vst.msk [vmem:[%s762_s28] sm:$0xff] %vm161_vm0, %v530_v45  ;;  %539 = vrsqrt.f32 %v333_v46  ;;  %318 = vst.msk [vmem:[%s762_s28 + $0x58] sm:$0xff] %vm161_vm0, %v301_v42 }
  0xdd   : > { %317 = vst.msk [vmem:[%s762_s28 + $0x50] sm:$0xff] %vm161_vm0, %v300_v43  ;;  %541 = vrsqrt.f32 %v332_v47  ;;  %v283_v49 = vpop.xlane.xlu1 %282  ;;  %v280_v50 = vpop.xlane.xlu0 %279 }
  0xde   : > { %v532_v51 = vpop.eup %531  ;;  %v303_v52 = vadd.f32 %v283_v49, %v191_v44  ;;  %v302_v53 = vadd.f32 %v280_v50, %v190_v48 }
  0xdf   : > { %v534_v55 = vpop.eup %533  ;;  %361 = vst.msk [vmem:[%s762_s28 + $0x18] sm:$0xff] %vm161_vm0, %v532_v51  ;;  %v335_v56 = vld [vmem:[%s762_s28 + $0x48] sm:$0xff]  ;;  %v334_v57 = vld [vmem:[%s762_s28 + $0x40] sm:$0xff] }
  0xe0   : > { %359 = vst.msk [vmem:[%s762_s28 + $0x8] sm:$0xff] %vm161_vm0, %v534_v55  ;;  %543 = vrsqrt.f32 %v335_v56  ;;  %320 = vst.msk [vmem:[%s762_s28 + $0x68] sm:$0xff] %vm161_vm0, %v303_v52 }
  0xe1   : > { %319 = vst.msk [vmem:[%s762_s28 + $0x60] sm:$0xff] %vm161_vm0, %v302_v53  ;;  %545 = vrsqrt.f32 %v334_v57  ;;  %v289_v59 = vpop.xlane.xlu1 %288  ;;  %v286_v60 = vpop.xlane.xlu0 %285 }
  0xe2   : > { %v536_v61 = vpop.eup %535  ;;  %v305_v62 = vadd.f32 %v289_v59, %v193_v54  ;;  %v304_v63 = vadd.f32 %v286_v60, %v192_v58 }
  0xe3   : > { %v538_v0 = vpop.eup %537  ;;  %363 = vst.msk [vmem:[%s762_s28 + $0x28] sm:$0xff] %vm161_vm0, %v536_v61  ;;  %v337_v1 = vld [vmem:[%s762_s28 + $0x58] sm:$0xff] }
  0xe4   : > { %v336_v2 = vld [vmem:[%s762_s28 + $0x50] sm:$0xff]  ;;  %362 = vst.msk [vmem:[%s762_s28 + $0x20] sm:$0xff] %vm161_vm0, %v538_v0  ;;  %547 = vrsqrt.f32 %v337_v1  ;;  %322 = vst.msk [vmem:[%s762_s28 + $0x78] sm:$0xff] %vm161_vm0, %v305_v62 }
  0xe5   : > { %321 = vst.msk [vmem:[%s762_s28 + $0x70] sm:$0xff] %vm161_vm0, %v304_v63  ;;  %549 = vrsqrt.f32 %v336_v2 }
  0xe6   : > { %v540_v3 = vpop.eup %539 }
  0xe7   : > { %v542_v4 = vpop.eup %541  ;;  %365 = vst.msk [vmem:[%s762_s28 + $0x38] sm:$0xff] %vm161_vm0, %v540_v3  ;;  %v339_v5 = vld [vmem:[%s762_s28 + $0x68] sm:$0xff] }
  0xe8   : > { %v338_v6 = vld [vmem:[%s762_s28 + $0x60] sm:$0xff]  ;;  %364 = vst.msk [vmem:[%s762_s28 + $0x30] sm:$0xff] %vm161_vm0, %v542_v4  ;;  %551 = vrsqrt.f32 %v339_v5 }
  0xe9   : > { %553 = vrsqrt.f32 %v338_v6 }
  0xea   : > { %v544_v7 = vpop.eup %543 }
  0xeb   : > { %v546_v8 = vpop.eup %545  ;;  %367 = vst.msk [vmem:[%s762_s28 + $0x48] sm:$0xff] %vm161_vm0, %v544_v7  ;;  %v341_v9 = vld [vmem:[%s762_s28 + $0x78] sm:$0xff] }
  0xec   : > { %v340_v10 = vld [vmem:[%s762_s28 + $0x70] sm:$0xff]  ;;  %366 = vst.msk [vmem:[%s762_s28 + $0x40] sm:$0xff] %vm161_vm0, %v546_v8  ;;  %555 = vrsqrt.f32 %v341_v9 }
  0xed   : > { %557 = vrsqrt.f32 %v340_v10 }
  0xee   : > { %v548_v11 = vpop.eup %547 }
  0xef   : > { %v550_v12 = vpop.eup %549  ;;  %369 = vst.msk [vmem:[%s762_s28 + $0x58] sm:$0xff] %vm161_vm0, %v548_v11 }
  0xf0   : > { %368 = vst.msk [vmem:[%s762_s28 + $0x50] sm:$0xff] %vm161_vm0, %v550_v12 }
  0xf2   : > { %v552_v13 = vpop.eup %551 }
  0xf3   : > { %v554_v14 = vpop.eup %553  ;;  %371 = vst.msk [vmem:[%s762_s28 + $0x68] sm:$0xff] %vm161_vm0, %v552_v13 }
  0xf4   : > { %370 = vst.msk [vmem:[%s762_s28 + $0x60] sm:$0xff] %vm161_vm0, %v554_v14 }
  0xf6   : > { %v556_v15 = vpop.eup %555 }
  0xf7   : > { %v558_v16 = vpop.eup %557  ;;  %373 = vst.msk [vmem:[%s762_s28 + $0x78] sm:$0xff] %vm161_vm0, %v556_v15 }
  0xf8   : > { %372 = vst.msk [vmem:[%s762_s28 + $0x70] sm:$0xff] %vm161_vm0, %v558_v16 }
  0xf9 PF: > { %s14_s11 = sadd.s32 1, %s639_s11   ;;  %s931_s6 = smov %s623_s7 }
  0xfa   : > { %p11_p7 = scmp.ge.s32.totalorder %s14_s11, 4   ;;  %s932_s7 = smov %s627_s8 }
  0xfb   : > { %s933_s8 = smov %s704_s18  ;;  %s934_s9 = smov %s635_s10 }
  0xfc   : > { %s935_s10 = smov %s937_s13  ;;  %13 = sbr.rel (!%p11_p7) target bundleno = 4 (0x4), region = 72 }
 0x103   :  { %396 = vsyncpa [#allocation3], 1 }
 0x104   :  { %398 = vsyncpa [#allocation3 + $0x1], 1 }

</bundles_post_ra>
